<compile_context>
chip_gen: v6e
topology: v6e:2x2x1
jax: 0.10.0
libtpu: 0.0.40
codegen_flags: <defaults>
</compile_context>

<pallas_src>
import functools
import numpy as np
import jax
import jax.numpy as jnp
from jax import lax
from jax.experimental import pallas as pl
from jax.experimental.pallas import tpu as pltpu


# ----------------------------------------------------------------------------------
# Pallas kernel: one batch per grid step, full time recurrence inside the kernel.
# ----------------------------------------------------------------------------------
def _decoder_kernel(
    ins_ref,        # [T-1, N, Din]  this batch's ground-truth inputs (f32)
    scale_ref,      # [E, ET]        rel_type / (norm * Din) for this batch (f32)
    rel_sr_ref,     # [2E, N]        rows 0..E-1 = rel_send, rows E..2E-1 = rel_rec
    rel_recT_ref,   # [N, E]         rel_rec^T
    w1s_ref,        # [H, ET*H]      fc1 send half, per-type concat on lanes
    w1r_ref,        # [H, ET*H]      fc1 recv half
    b1_ref,         # [1, ET*H]
    w2_ref,         # [ET, H, H]     per-type fc2
    b2_ref,         # [ET, 1, H]
    w_in3_ref,      # [Din, 3H]      input_r | input_i | input_n
    b_in3_ref,      # [1, 3H]
    w_h3_ref,       # [H, 3H]        hidden_r | hidden_i | hidden_h (no bias)
    o1_w_ref, o1_b_ref, o2_w_ref, o2_b_ref, o3_w_ref, o3_b_ref,
    pred_out_ref,   # [T-1, N, Din]  predictions for this batch
    *, pred_steps, skip_first, n_hid, edge_types, n_edges, mm_dtype):
  f32 = jnp.float32
  H, E, ET = n_hid, n_edges, edge_types
  Tm1, N, Din = ins_ref.shape

  def mdot(a, b):
    # MXU matmul: operands in mm_dtype (bf16 in fast mode), f32 accumulation.
    return jnp.dot(a.astype(mm_dtype), b.astype(mm_dtype),
                   preferred_element_type=f32)

  # Load all time-invariant operands once; they stay VMEM/vreg-resident across steps.
  scale = scale_ref[...]
  rel_sr = rel_sr_ref[...]
  rel_recT = rel_recT_ref[...]
  w1s, w1r, b1 = w1s_ref[...], w1r_ref[...], b1_ref[...]
  w2, b2 = w2_ref[...], b2_ref[...]
  w_in3, b_in3, w_h3 = w_in3_ref[...], b_in3_ref[...], w_h3_ref[...]
  o1w, o1b = o1_w_ref[...], o1_b_ref[...]
  o2w, o2b = o2_w_ref[...], o2_b_ref[...]
  o3w, o3b = o3_w_ref[...], o3_b_ref[...]

  start_type = 1 if skip_first else 0

  def step(t, carry):
    h, prev = carry                                   # [N,H] f32, [N,Din] f32

    # Teacher forcing vs. feedback (pred_steps > 1 uses the previous prediction).
    if pred_steps == 1:
      x = ins_ref[t]
    else:
      x = jnp.where((t % pred_steps) == 0, ins_ref[t], prev)

    # Senders / receivers with ONE matmul on the stacked relation matrix.
    sr = mdot(rel_sr, h)                              # [2E, H]
    send, recv = sr[:E], sr[E:]

    # Per-edge-type message MLP (fc1 merged over types on lanes; fc2 per type).
    m_pre = jnp.tanh(mdot(send, w1s) + mdot(recv, w1r) + b1)   # [E, ET*H]
    # TODO(synk): F.dropout with do_prob > 0 not implemented (do_prob=0.0 -> identity).
    m_sum = jnp.zeros((E, H), f32)
    for i in range(start_type, ET):                   # static unroll over edge types
      mi = jnp.tanh(mdot(m_pre[:, i * H:(i + 1) * H], w2[i]) + b2[i])   # [E, H]
      m_sum = m_sum + mi * scale[:, i:i + 1]          # rel_type/(norm*Din) folded in

    # Type-sum commutes with aggregation -> plain [N,E] x [E,H] matmul.
    agg = mdot(rel_recT, m_sum)                       # [N, H]

    # GRU gates: one fused input matmul + one fused hidden matmul.
    gi = mdot(x, w_in3) + b_in3                       # [N, 3H]
    gh = mdot(agg, w_h3)                              # [N, 3H]
    r = jax.nn.sigmoid(gi[:, :H] + gh[:, :H])
    ig = jax.nn.sigmoid(gi[:, H:2 * H] + gh[:, H:2 * H])
    ng = jnp.tanh(gi[:, 2 * H:] + r * gh[:, 2 * H:])
    h_new = (1.0 - ig) * ng + ig * h

    # Output MLP + residual.
    p = jax.nn.relu(mdot(h_new, o1w) + o1b)
    p = jax.nn.relu(mdot(p, o2w) + o2b)
    p = mdot(p, o3w) + o3b
    pred = x + p

    pred_out_ref[t] = pred.astype(pred_out_ref.dtype)
    return h_new, pred

  h0 = jnp.zeros((N, H), f32)
  p0 = jnp.zeros((N, Din), f32)
  lax.fori_loop(0, Tm1, step, (h0, p0))


# ----------------------------------------------------------------------------------
# Full RNNDecoder.forward wrapper (one pallas_call; grid axis = batch).
# ----------------------------------------------------------------------------------
def rnn_decoder_forward(data, rel_type, rel_rec, rel_send, params,
                        pred_steps=1, skip_first=False,
                        matmul_dtype=jnp.float32):
  # data: [B, N_atoms, T, D_in]  (PyTorch module convention)
  B, N, T, Din = data.shape
  E = rel_rec.shape[0]
  ET = params["fc1_w"].shape[0]
  H = params["fc2_w"].shape[-1]
  Tm1 = T - 1
  f32, mm = jnp.float32, matmul_dtype

  # Inputs per (batch, time): ins_all[b, t] = data[b, :, t, :]
  ins_all = jnp.transpose(data, (0, 2, 1, 3))[:, :Tm1].astype(f32)      # [B, Tm1, N, Din]

  # Shared relation matrices (NO block-diagonal batch fusion).
  rel_sr = jnp.concatenate([rel_send, rel_rec], axis=0).astype(mm)      # [2E, N]
  rel_recT = jnp.transpose(rel_rec).astype(mm)                          # [N, E]

  # Fold rel_type, 1/norm and 1/n_in_node into one tiny per-edge scale.
  norm = float(ET - 1) if skip_first else float(ET)
  scale = rel_type.astype(f32) / (norm * float(Din))                    # [B, E, ET]

  # Message MLP weights: fc1 split into send/recv halves, merged over types on lanes.
  fc1_w, fc1_b = params["fc1_w"], params["fc1_b"]                       # [ET,2H,H],[ET,1,H]
  w1s = jnp.concatenate([fc1_w[i, :H, :] for i in range(ET)], axis=1).astype(mm)  # [H, ET*H]
  w1r = jnp.concatenate([fc1_w[i, H:, :] for i in range(ET)], axis=1).astype(mm)  # [H, ET*H]
  b1 = fc1_b.reshape(1, ET * H).astype(f32)
  w2 = params["fc2_w"].astype(mm)                                        # [ET, H, H]
  b2 = params["fc2_b"].astype(f32)                                       # [ET, 1, H]

  # Fused GRU weights.
  w_in3 = jnp.concatenate([params["ir_w"], params["ii_w"], params["in_w"]], axis=1).astype(mm)
  b_in3 = jnp.concatenate([params["ir_b"], params["ii_b"], params["in_b"]], axis=1).astype(f32)
  w_h3 = jnp.concatenate([params["hr_w"], params["hi_w"], params["hh_w"]], axis=1).astype(mm)

  o1_w, o1_b = params["o1_w"].astype(mm), params["o1_b"].astype(f32)
  o2_w, o2_b = params["o2_w"].astype(mm), params["o2_b"].astype(f32)
  o3_w, o3_b = params["o3_w"].astype(mm), params["o3_b"].astype(f32)

  const_args = (rel_sr, rel_recT, w1s, w1r, b1, w2, b2, w_in3, b_in3, w_h3,
                o1_w, o1_b, o2_w, o2_b, o3_w, o3_b)

  def const_spec(a):
    zeros = (0,) * a.ndim
    def idx(b):
      return zeros
    return pl.BlockSpec(a.shape, idx)

  in_specs = (
      [pl.BlockSpec((None, Tm1, N, Din), lambda b: (b, 0, 0, 0)),   # per-batch inputs
       pl.BlockSpec((None, E, ET), lambda b: (b, 0, 0))]            # per-batch scale
      + [const_spec(a) for a in const_args])                        # VMEM-resident weights
  out_specs = pl.BlockSpec((None, Tm1, N, Din), lambda b: (b, 0, 0, 0))
  out_shape = jax.ShapeDtypeStruct((B, Tm1, N, Din), f32)

  # Explicit VMEM budget: resident weights/relations + double-buffered per-batch blocks.
  nbytes = lambda a: int(np.prod(a.shape)) * jnp.dtype(a.dtype).itemsize
  resident = sum(nbytes(a) for a in const_args)
  per_batch = 2 * Tm1 * N * Din * 4 + E * ET * 4
  vmem_limit = int(min(64 << 20, max(16 << 20, 2 * (resident + 2 * per_batch) + (2 << 20))))

  kernel = functools.partial(
      _decoder_kernel, pred_steps=pred_steps, skip_first=skip_first,
      n_hid=H, edge_types=ET, n_edges=E, mm_dtype=mm)

  preds = pl.pallas_call(
      kernel,
      grid=(B,),
      in_specs=in_specs,
      out_specs=out_specs,
      out_shape=out_shape,
      compiler_params=pltpu.CompilerParams(
          dimension_semantics=("parallel",),        # batch axis -> v7x dual-TC sharding
          vmem_limit_bytes=vmem_limit),
  )(ins_all, scale, *const_args)

  return jnp.transpose(preds, (0, 2, 1, 3))          # [B, N_atoms, T-1, D_in]


# ----------------------------------------------------------------------------------
# Pure-JAX reference (mirrors the PyTorch module exactly; no merging).
# ----------------------------------------------------------------------------------
def _ref_single_step(ins, hidden, rel_rec, rel_send, rel_type, p, skip_first):
  ET = p["fc1_w"].shape[0]
  recv = jnp.einsum("en,bnh->beh", rel_rec, hidden)
  send = jnp.einsum("en,bnh->beh", rel_send, hidden)
  pre_msg = jnp.concatenate([send, recv], axis=-1)
  start = 1 if skip_first else 0
  norm = float(ET - 1) if skip_first else float(ET)
  all_msgs = jnp.zeros(pre_msg.shape[:2] + (p["fc2_w"].shape[-1],), jnp.float32)
  for i in range(start, ET):
    msg = jnp.tanh(pre_msg @ p["fc1_w"][i] + p["fc1_b"][i])
    msg = jnp.tanh(msg @ p["fc2_w"][i] + p["fc2_b"][i])
    msg = msg * rel_type[:, :, i:i + 1]
    all_msgs = all_msgs + msg / norm
  agg = jnp.einsum("beh,en->bnh", all_msgs, rel_rec) / ins.shape[-1]
  r = jax.nn.sigmoid(ins @ p["ir_w"] + p["ir_b"] + agg @ p["hr_w"])
  ig = jax.nn.sigmoid(ins @ p["ii_w"] + p["ii_b"] + agg @ p["hi_w"])
  ng = jnp.tanh(ins @ p["in_w"] + p["in_b"] + r * (agg @ p["hh_w"]))
  h_new = (1.0 - ig) * ng + ig * hidden
  pr = jax.nn.relu(h_new @ p["o1_w"] + p["o1_b"])
  pr = jax.nn.relu(pr @ p["o2_w"] + p["o2_b"])
  pr = pr @ p["o3_w"] + p["o3_b"]
  return ins + pr, h_new


def _ref_forward(data, rel_type, rel_rec, rel_send, p, pred_steps=1, skip_first=False):
  inputs = jnp.transpose(data, (0, 2, 1, 3))
  B, T, N, Din = inputs.shape
  hidden = jnp.zeros((B, N, p["hr_w"].shape[0]), jnp.float32)
  preds = []
  for step in range(T - 1):
    ins = inputs[:, step] if step % pred_steps == 0 else preds[step - 1]
    pred, hidden = _ref_single_step(ins, hidden, rel_rec, rel_send, rel_type, p, skip_first)
    preds.append(pred)
  return jnp.transpose(jnp.stack(preds, axis=1), (0, 2, 1, 3))


# ----------------------------------------------------------------------------------
# Deterministic parameter init (shapes per RNNDecoder.__init__).
# ----------------------------------------------------------------------------------
def init_params(key, n_in_node, edge_types, n_hid):
  ks = jax.random.split(key, 32)
  u = lambda k, shape, fan_in: jax.random.uniform(
      k, shape, jnp.float32, -1.0 / np.sqrt(fan_in), 1.0 / np.sqrt(fan_in))
  return {
      "fc1_w": u(ks[0], (edge_types, 2 * n_hid, n_hid), 2 * n_hid),
      "fc1_b": u(ks[1], (edge_types, 1, n_hid), 2 * n_hid),
      "fc2_w": u(ks[2], (edge_types, n_hid, n_hid), n_hid),
      "fc2_b": u(ks[3], (edge_types, 1, n_hid), n_hid),
      "hr_w": u(ks[4], (n_hid, n_hid), n_hid),
      "hi_w": u(ks[5], (n_hid, n_hid), n_hid),
      "hh_w": u(ks[6], (n_hid, n_hid), n_hid),
      "ir_w": u(ks[7], (n_in_node, n_hid), n_in_node),
      "ir_b": u(ks[8], (1, n_hid), n_in_node),
      "ii_w": u(ks[9], (n_in_node, n_hid), n_in_node),
      "ii_b": u(ks[10], (1, n_hid), n_in_node),
      "in_w": u(ks[11], (n_in_node, n_hid), n_in_node),
      "in_b": u(ks[12], (1, n_hid), n_in_node),
      "o1_w": u(ks[13], (n_hid, n_hid), n_hid),
      "o1_b": u(ks[14], (1, n_hid), n_hid),
      "o2_w": u(ks[15], (n_hid, n_hid), n_hid),
      "o2_b": u(ks[16], (1, n_hid), n_hid),
      "o3_w": u(ks[17], (n_hid, n_in_node), n_hid),
      "o3_b": u(ks[18], (1, n_in_node), n_hid),
  }


if __name__ == "__main__":
  B, N_ATOMS, T, D_IN = 2, 4, 8, 4
  N_HID, EDGE_TYPES = 32, 2
  E = N_ATOMS * (N_ATOMS - 1)          # 12 directed edges (off-diagonal)

  key = jax.random.PRNGKey(0)
  k_data, k_rel, k_par = jax.random.split(key, 3)

  # NRI-style fully connected graph (no self loops).
  off_diag = np.ones((N_ATOMS, N_ATOMS)) - np.eye(N_ATOMS)
  recv_idx, send_idx = np.where(off_diag)
  rel_rec = jnp.asarray(np.eye(N_ATOMS, dtype=np.float32)[recv_idx])    # [E, N]
  rel_send = jnp.asarray(np.eye(N_ATOMS, dtype=np.float32)[send_idx])   # [E, N]

  data = jax.random.normal(k_data, (B, N_ATOMS, T, D_IN), jnp.float32)
  rel_type = jax.nn.softmax(
      jax.random.normal(k_rel, (B, E, EDGE_TYPES), jnp.float32), axis=-1)

  params = init_params(k_par, D_IN, EDGE_TYPES, N_HID)

  # TODO(synk): burn_in / dynamic_graph encoder path of forward() is not implemented.

  # f32-operand runs: match the pure-JAX reference tightly.
  for pred_steps, skip_first in [(1, False), (2, True)]:
    fwd = jax.jit(functools.partial(rnn_decoder_forward,
                                    pred_steps=pred_steps, skip_first=skip_first))
    out = jax.block_until_ready(fwd(data, rel_type, rel_rec, rel_send, params))
    ref = jax.block_until_ready(
        _ref_forward(data, rel_type, rel_rec, rel_send, params,
                     pred_steps=pred_steps, skip_first=skip_first))
    assert out.shape == (B, N_ATOMS, T - 1, D_IN), out.shape
    np.testing.assert_allclose(np.asarray(out), np.asarray(ref), rtol=2e-4, atol=2e-4)

  # bf16-operand run (MXU-rate path; f32 accumulation and carries): loose tolerance.
  fwd_bf16 = jax.jit(functools.partial(rnn_decoder_forward, pred_steps=1,
                                       skip_first=False, matmul_dtype=jnp.bfloat16))
  out_bf16 = jax.block_until_ready(fwd_bf16(data, rel_type, rel_rec, rel_send, params))
  ref_f32 = _ref_forward(data, rel_type, rel_rec, rel_send, params,
                         pred_steps=1, skip_first=False)
  np.testing.assert_allclose(np.asarray(out_bf16), np.asarray(ref_f32),
                             rtol=1e-1, atol=1e-1)

  print("KERNEL_OK")
</pallas_src>

<mosaic_0001>
module attributes {stable_mosaic.version = 11 : i64} {
  func.func @_decoder_kernel(%arg0: i32, %arg1: memref<1x7x4x4xf32, #tpu.memory_space<vmem>>, %arg2: memref<1x12x2xf32, #tpu.memory_space<vmem>>, %arg3: memref<24x4xf32, #tpu.memory_space<vmem>>, %arg4: memref<4x12xf32, #tpu.memory_space<vmem>>, %arg5: memref<32x64xf32, #tpu.memory_space<vmem>>, %arg6: memref<32x64xf32, #tpu.memory_space<vmem>>, %arg7: memref<1x64xf32, #tpu.memory_space<vmem>>, %arg8: memref<2x32x32xf32, #tpu.memory_space<vmem>>, %arg9: memref<2x1x32xf32, #tpu.memory_space<vmem>>, %arg10: memref<4x96xf32, #tpu.memory_space<vmem>>, %arg11: memref<1x96xf32, #tpu.memory_space<vmem>>, %arg12: memref<32x96xf32, #tpu.memory_space<vmem>>, %arg13: memref<32x32xf32, #tpu.memory_space<vmem>>, %arg14: memref<1x32xf32, #tpu.memory_space<vmem>>, %arg15: memref<32x32xf32, #tpu.memory_space<vmem>>, %arg16: memref<1x32xf32, #tpu.memory_space<vmem>>, %arg17: memref<32x4xf32, #tpu.memory_space<vmem>>, %arg18: memref<1x4xf32, #tpu.memory_space<vmem>>, %arg19: memref<1x7x4x4xf32, #tpu.memory_space<vmem>>) attributes {dimension_semantics = [#tpu.dimension_semantics<parallel>], iteration_bounds = array<i64: 2>, scalar_prefetch = 0 : i64, scratch_operands = 0 : i64, tpu.core_type = #tpu.core_type<tc>, window_params = [{transform_indices = @transform_0, window_bounds = array<i64: 1, 7, 4, 4>}, {transform_indices = @transform_1, window_bounds = array<i64: 1, 12, 2>}, {pipeline_mode = #tpu.pipeline_mode<synchronous>, transform_indices = @transform_2, window_bounds = array<i64: 24, 4>}, {pipeline_mode = #tpu.pipeline_mode<synchronous>, transform_indices = @transform_3, window_bounds = array<i64: 4, 12>}, {pipeline_mode = #tpu.pipeline_mode<synchronous>, transform_indices = @transform_4, window_bounds = array<i64: 32, 64>}, {pipeline_mode = #tpu.pipeline_mode<synchronous>, transform_indices = @transform_5, window_bounds = array<i64: 32, 64>}, {pipeline_mode = #tpu.pipeline_mode<synchronous>, transform_indices = @transform_6, window_bounds = array<i64: 1, 64>}, {pipeline_mode = #tpu.pipeline_mode<synchronous>, transform_indices = @transform_7, window_bounds = array<i64: 2, 32, 32>}, {pipeline_mode = #tpu.pipeline_mode<synchronous>, transform_indices = @transform_8, window_bounds = array<i64: 2, 1, 32>}, {pipeline_mode = #tpu.pipeline_mode<synchronous>, transform_indices = @transform_9, window_bounds = array<i64: 4, 96>}, {pipeline_mode = #tpu.pipeline_mode<synchronous>, transform_indices = @transform_10, window_bounds = array<i64: 1, 96>}, {pipeline_mode = #tpu.pipeline_mode<synchronous>, transform_indices = @transform_11, window_bounds = array<i64: 32, 96>}, {pipeline_mode = #tpu.pipeline_mode<synchronous>, transform_indices = @transform_12, window_bounds = array<i64: 32, 32>}, {pipeline_mode = #tpu.pipeline_mode<synchronous>, transform_indices = @transform_13, window_bounds = array<i64: 1, 32>}, {pipeline_mode = #tpu.pipeline_mode<synchronous>, transform_indices = @transform_14, window_bounds = array<i64: 32, 32>}, {pipeline_mode = #tpu.pipeline_mode<synchronous>, transform_indices = @transform_15, window_bounds = array<i64: 1, 32>}, {pipeline_mode = #tpu.pipeline_mode<synchronous>, transform_indices = @transform_16, window_bounds = array<i64: 32, 4>}, {pipeline_mode = #tpu.pipeline_mode<synchronous>, transform_indices = @transform_17, window_bounds = array<i64: 1, 4>}, {transform_indices = @transform_18, window_bounds = array<i64: 1, 7, 4, 4>}]} {
    %c0 = arith.constant 0 : index
    %c0_0 = arith.constant 0 : index
    %c0_1 = arith.constant 0 : index
    %0 = vector.load %arg2[%c0, %c0_0, %c0_1] : memref<1x12x2xf32, #tpu.memory_space<vmem>>, vector<1x12x2xf32>
    %1 = vector.shape_cast %0 : vector<1x12x2xf32> to vector<12x2xf32>
    %c0_2 = arith.constant 0 : index
    %c0_3 = arith.constant 0 : index
    %2 = vector.load %arg3[%c0_2, %c0_3] : memref<24x4xf32, #tpu.memory_space<vmem>>, vector<24x4xf32>
    %c0_4 = arith.constant 0 : index
    %c0_5 = arith.constant 0 : index
    %3 = vector.load %arg4[%c0_4, %c0_5] : memref<4x12xf32, #tpu.memory_space<vmem>>, vector<4x12xf32>
    %c0_6 = arith.constant 0 : index
    %c0_7 = arith.constant 0 : index
    %4 = vector.load %arg5[%c0_6, %c0_7] : memref<32x64xf32, #tpu.memory_space<vmem>>, vector<32x64xf32>
    %c0_8 = arith.constant 0 : index
    %c0_9 = arith.constant 0 : index
    %5 = vector.load %arg6[%c0_8, %c0_9] : memref<32x64xf32, #tpu.memory_space<vmem>>, vector<32x64xf32>
    %c0_10 = arith.constant 0 : index
    %c0_11 = arith.constant 0 : index
    %6 = vector.load %arg7[%c0_10, %c0_11] : memref<1x64xf32, #tpu.memory_space<vmem>>, vector<1x64xf32>
    %c0_12 = arith.constant 0 : index
    %c0_13 = arith.constant 0 : index
    %c0_14 = arith.constant 0 : index
    %7 = vector.load %arg8[%c0_12, %c0_13, %c0_14] : memref<2x32x32xf32, #tpu.memory_space<vmem>>, vector<2x32x32xf32>
    %c0_15 = arith.constant 0 : index
    %c0_16 = arith.constant 0 : index
    %c0_17 = arith.constant 0 : index
    %8 = vector.load %arg9[%c0_15, %c0_16, %c0_17] : memref<2x1x32xf32, #tpu.memory_space<vmem>>, vector<2x1x32xf32>
    %c0_18 = arith.constant 0 : index
    %c0_19 = arith.constant 0 : index
    %9 = vector.load %arg10[%c0_18, %c0_19] : memref<4x96xf32, #tpu.memory_space<vmem>>, vector<4x96xf32>
    %c0_20 = arith.constant 0 : index
    %c0_21 = arith.constant 0 : index
    %10 = vector.load %arg11[%c0_20, %c0_21] : memref<1x96xf32, #tpu.memory_space<vmem>>, vector<1x96xf32>
    %c0_22 = arith.constant 0 : index
    %c0_23 = arith.constant 0 : index
    %11 = vector.load %arg12[%c0_22, %c0_23] : memref<32x96xf32, #tpu.memory_space<vmem>>, vector<32x96xf32>
    %c0_24 = arith.constant 0 : index
    %c0_25 = arith.constant 0 : index
    %12 = vector.load %arg13[%c0_24, %c0_25] : memref<32x32xf32, #tpu.memory_space<vmem>>, vector<32x32xf32>
    %c0_26 = arith.constant 0 : index
    %c0_27 = arith.constant 0 : index
    %13 = vector.load %arg14[%c0_26, %c0_27] : memref<1x32xf32, #tpu.memory_space<vmem>>, vector<1x32xf32>
    %c0_28 = arith.constant 0 : index
    %c0_29 = arith.constant 0 : index
    %14 = vector.load %arg15[%c0_28, %c0_29] : memref<32x32xf32, #tpu.memory_space<vmem>>, vector<32x32xf32>
    %c0_30 = arith.constant 0 : index
    %c0_31 = arith.constant 0 : index
    %15 = vector.load %arg16[%c0_30, %c0_31] : memref<1x32xf32, #tpu.memory_space<vmem>>, vector<1x32xf32>
    %c0_32 = arith.constant 0 : index
    %c0_33 = arith.constant 0 : index
    %16 = vector.load %arg17[%c0_32, %c0_33] : memref<32x4xf32, #tpu.memory_space<vmem>>, vector<32x4xf32>
    %c0_34 = arith.constant 0 : index
    %c0_35 = arith.constant 0 : index
    %17 = vector.load %arg18[%c0_34, %c0_35] : memref<1x4xf32, #tpu.memory_space<vmem>>, vector<1x4xf32>
    %cst = arith.constant 0.000000e+00 : f32
    %18 = vector.broadcast %cst : f32 to vector<4x32xf32>
    %c0_i32 = arith.constant 0 : i32
    %c7_i32 = arith.constant 7 : i32
    %19 = arith.addi %c0_i32, %c7_i32 : i32
    %c1_i32 = arith.constant 1 : i32
    %20 = scf.for %arg20 = %c0_i32 to %19 step %c1_i32 iter_args(%arg21 = %18) -> (vector<4x32xf32>)  : i32 {
      %c0_37 = arith.constant 0 : index
      %21 = arith.index_cast %arg20 : i32 to index
      %c0_38 = arith.constant 0 : index
      %c0_39 = arith.constant 0 : index
      %22 = vector.load %arg1[%c0_37, %21, %c0_38, %c0_39] : memref<1x7x4x4xf32, #tpu.memory_space<vmem>>, vector<1x1x4x4xf32>
      %23 = vector.shape_cast %22 : vector<1x1x4x4xf32> to vector<4x4xf32>
      %cst_40 = arith.constant dense<0.000000e+00> : vector<24x32xf32>
      %24 = tpu.matmul %2, %arg21, %cst_40 {dimension_numbers = #tpu.dot_dimension_numbers<[1], [0], [0], [1], [0, 0, 1, 1], [], []>} : vector<24x4xf32>, vector<4x32xf32>, vector<24x32xf32> -> vector<24x32xf32>
      %25 = vector.extract_strided_slice %24 {offsets = [0, 0], sizes = [12, 32], strides = [1, 1]} : vector<24x32xf32> to vector<12x32xf32>
      %26 = vector.extract_strided_slice %24 {offsets = [12, 0], sizes = [12, 32], strides = [1, 1]} : vector<24x32xf32> to vector<12x32xf32>
      %cst_41 = arith.constant dense<0.000000e+00> : vector<12x64xf32>
      %27 = tpu.matmul %25, %4, %cst_41 {dimension_numbers = #tpu.dot_dimension_numbers<[1], [0], [0], [1], [0, 0, 1, 1], [], []>} : vector<12x32xf32>, vector<32x64xf32>, vector<12x64xf32> -> vector<12x64xf32>
      %cst_42 = arith.constant dense<0.000000e+00> : vector<12x64xf32>
      %28 = tpu.matmul %26, %5, %cst_42 {dimension_numbers = #tpu.dot_dimension_numbers<[1], [0], [0], [1], [0, 0, 1, 1], [], []>} : vector<12x32xf32>, vector<32x64xf32>, vector<12x64xf32> -> vector<12x64xf32>
      %29 = arith.addf %27, %28 : vector<12x64xf32>
      %30 = vector.broadcast %6 : vector<1x64xf32> to vector<12x64xf32>
      %31 = arith.addf %29, %30 : vector<12x64xf32>
      %32 = math.tanh %31 : vector<12x64xf32>
      %cst_43 = arith.constant 0.000000e+00 : f32
      %33 = vector.broadcast %cst_43 : f32 to vector<12x32xf32>
      %34 = vector.extract_strided_slice %32 {offsets = [0, 0], sizes = [12, 32], strides = [1, 1]} : vector<12x64xf32> to vector<12x32xf32>
      %35 = vector.extract_strided_slice %7 {offsets = [0, 0, 0], sizes = [1, 32, 32], strides = [1, 1, 1]} : vector<2x32x32xf32> to vector<1x32x32xf32>
      %36 = vector.shape_cast %35 : vector<1x32x32xf32> to vector<32x32xf32>
      %cst_44 = arith.constant dense<0.000000e+00> : vector<12x32xf32>
      %37 = tpu.matmul %34, %36, %cst_44 {dimension_numbers = #tpu.dot_dimension_numbers<[1], [0], [0], [1], [0, 0, 1, 1], [], []>} : vector<12x32xf32>, vector<32x32xf32>, vector<12x32xf32> -> vector<12x32xf32>
      %38 = vector.extract_strided_slice %8 {offsets = [0, 0, 0], sizes = [1, 1, 32], strides = [1, 1, 1]} : vector<2x1x32xf32> to vector<1x1x32xf32>
      %39 = vector.shape_cast %38 : vector<1x1x32xf32> to vector<1x32xf32>
      %40 = vector.broadcast %39 : vector<1x32xf32> to vector<12x32xf32>
      %41 = arith.addf %37, %40 : vector<12x32xf32>
      %42 = math.tanh %41 : vector<12x32xf32>
      %43 = vector.extract_strided_slice %1 {offsets = [0, 0], sizes = [12, 1], strides = [1, 1]} : vector<12x2xf32> to vector<12x1xf32>
      %44 = vector.broadcast %43 : vector<12x1xf32> to vector<12x32xf32>
      %45 = arith.mulf %42, %44 : vector<12x32xf32>
      %46 = arith.addf %33, %45 : vector<12x32xf32>
      %47 = vector.extract_strided_slice %32 {offsets = [0, 32], sizes = [12, 32], strides = [1, 1]} : vector<12x64xf32> to vector<12x32xf32>
      %48 = vector.extract_strided_slice %7 {offsets = [1, 0, 0], sizes = [1, 32, 32], strides = [1, 1, 1]} : vector<2x32x32xf32> to vector<1x32x32xf32>
      %49 = vector.shape_cast %48 : vector<1x32x32xf32> to vector<32x32xf32>
      %cst_45 = arith.constant dense<0.000000e+00> : vector<12x32xf32>
      %50 = tpu.matmul %47, %49, %cst_45 {dimension_numbers = #tpu.dot_dimension_numbers<[1], [0], [0], [1], [0, 0, 1, 1], [], []>} : vector<12x32xf32>, vector<32x32xf32>, vector<12x32xf32> -> vector<12x32xf32>
      %51 = vector.extract_strided_slice %8 {offsets = [1, 0, 0], sizes = [1, 1, 32], strides = [1, 1, 1]} : vector<2x1x32xf32> to vector<1x1x32xf32>
      %52 = vector.shape_cast %51 : vector<1x1x32xf32> to vector<1x32xf32>
      %53 = vector.broadcast %52 : vector<1x32xf32> to vector<12x32xf32>
      %54 = arith.addf %50, %53 : vector<12x32xf32>
      %55 = math.tanh %54 : vector<12x32xf32>
      %56 = vector.extract_strided_slice %1 {offsets = [0, 1], sizes = [12, 1], strides = [1, 1]} : vector<12x2xf32> to vector<12x1xf32>
      %57 = vector.broadcast %56 : vector<12x1xf32> to vector<12x32xf32>
      %58 = arith.mulf %55, %57 : vector<12x32xf32>
      %59 = arith.addf %46, %58 : vector<12x32xf32>
      %cst_46 = arith.constant dense<0.000000e+00> : vector<4x32xf32>
      %60 = tpu.matmul %3, %59, %cst_46 {dimension_numbers = #tpu.dot_dimension_numbers<[1], [0], [0], [1], [0, 0, 1, 1], [], []>} : vector<4x12xf32>, vector<12x32xf32>, vector<4x32xf32> -> vector<4x32xf32>
      %cst_47 = arith.constant dense<0.000000e+00> : vector<4x96xf32>
      %61 = tpu.matmul %23, %9, %cst_47 {dimension_numbers = #tpu.dot_dimension_numbers<[1], [0], [0], [1], [0, 0, 1, 1], [], []>} : vector<4x4xf32>, vector<4x96xf32>, vector<4x96xf32> -> vector<4x96xf32>
      %62 = vector.broadcast %10 : vector<1x96xf32> to vector<4x96xf32>
      %63 = arith.addf %61, %62 : vector<4x96xf32>
      %cst_48 = arith.constant dense<0.000000e+00> : vector<4x96xf32>
      %64 = tpu.matmul %60, %11, %cst_48 {dimension_numbers = #tpu.dot_dimension_numbers<[1], [0], [0], [1], [0, 0, 1, 1], [], []>} : vector<4x32xf32>, vector<32x96xf32>, vector<4x96xf32> -> vector<4x96xf32>
      %65 = vector.extract_strided_slice %63 {offsets = [0, 0], sizes = [4, 32], strides = [1, 1]} : vector<4x96xf32> to vector<4x32xf32>
      %66 = vector.extract_strided_slice %64 {offsets = [0, 0], sizes = [4, 32], strides = [1, 1]} : vector<4x96xf32> to vector<4x32xf32>
      %67 = arith.addf %65, %66 : vector<4x32xf32>
      %68 = arith.negf %67 : vector<4x32xf32>
      %69 = math.exp %68 : vector<4x32xf32>
      %cst_49 = arith.constant 1.000000e+00 : f32
      %70 = vector.broadcast %cst_49 : f32 to vector<4x32xf32>
      %71 = arith.addf %70, %69 : vector<4x32xf32>
      %72 = arith.divf %70, %71 : vector<4x32xf32>
      %73 = vector.extract_strided_slice %63 {offsets = [0, 32], sizes = [4, 32], strides = [1, 1]} : vector<4x96xf32> to vector<4x32xf32>
      %74 = vector.extract_strided_slice %64 {offsets = [0, 32], sizes = [4, 32], strides = [1, 1]} : vector<4x96xf32> to vector<4x32xf32>
      %75 = arith.addf %73, %74 : vector<4x32xf32>
      %76 = arith.negf %75 : vector<4x32xf32>
      %77 = math.exp %76 : vector<4x32xf32>
      %cst_50 = arith.constant 1.000000e+00 : f32
      %78 = vector.broadcast %cst_50 : f32 to vector<4x32xf32>
      %79 = arith.addf %78, %77 : vector<4x32xf32>
      %80 = arith.divf %78, %79 : vector<4x32xf32>
      %81 = vector.extract_strided_slice %63 {offsets = [0, 64], sizes = [4, 32], strides = [1, 1]} : vector<4x96xf32> to vector<4x32xf32>
      %82 = vector.extract_strided_slice %64 {offsets = [0, 64], sizes = [4, 32], strides = [1, 1]} : vector<4x96xf32> to vector<4x32xf32>
      %83 = arith.mulf %72, %82 : vector<4x32xf32>
      %84 = arith.addf %81, %83 : vector<4x32xf32>
      %85 = math.tanh %84 : vector<4x32xf32>
      %cst_51 = arith.constant 1.000000e+00 : f32
      %86 = vector.broadcast %cst_51 : f32 to vector<4x32xf32>
      %87 = arith.subf %86, %80 : vector<4x32xf32>
      %88 = arith.mulf %87, %85 : vector<4x32xf32>
      %89 = arith.mulf %80, %arg21 : vector<4x32xf32>
      %90 = arith.addf %88, %89 : vector<4x32xf32>
      %cst_52 = arith.constant dense<0.000000e+00> : vector<4x32xf32>
      %91 = tpu.matmul %90, %12, %cst_52 {dimension_numbers = #tpu.dot_dimension_numbers<[1], [0], [0], [1], [0, 0, 1, 1], [], []>} : vector<4x32xf32>, vector<32x32xf32>, vector<4x32xf32> -> vector<4x32xf32>
      %92 = vector.broadcast %13 : vector<1x32xf32> to vector<4x32xf32>
      %93 = arith.addf %91, %92 : vector<4x32xf32>
      %cst_53 = arith.constant 0.000000e+00 : f32
      %94 = vector.broadcast %cst_53 : f32 to vector<4x32xf32>
      %95 = arith.maximumf %93, %94 : vector<4x32xf32>
      %cst_54 = arith.constant dense<0.000000e+00> : vector<4x32xf32>
      %96 = tpu.matmul %95, %14, %cst_54 {dimension_numbers = #tpu.dot_dimension_numbers<[1], [0], [0], [1], [0, 0, 1, 1], [], []>} : vector<4x32xf32>, vector<32x32xf32>, vector<4x32xf32> -> vector<4x32xf32>
      %97 = vector.broadcast %15 : vector<1x32xf32> to vector<4x32xf32>
      %98 = arith.addf %96, %97 : vector<4x32xf32>
      %cst_55 = arith.constant 0.000000e+00 : f32
      %99 = vector.broadcast %cst_55 : f32 to vector<4x32xf32>
      %100 = arith.maximumf %98, %99 : vector<4x32xf32>
      %cst_56 = arith.constant dense<0.000000e+00> : vector<4x4xf32>
      %101 = tpu.matmul %100, %16, %cst_56 {dimension_numbers = #tpu.dot_dimension_numbers<[1], [0], [0], [1], [0, 0, 1, 1], [], []>} : vector<4x32xf32>, vector<32x4xf32>, vector<4x4xf32> -> vector<4x4xf32>
      %102 = vector.broadcast %17 : vector<1x4xf32> to vector<4x4xf32>
      %103 = arith.addf %101, %102 : vector<4x4xf32>
      %104 = arith.addf %23, %103 : vector<4x4xf32>
      %c0_57 = arith.constant 0 : index
      %105 = arith.index_cast %arg20 : i32 to index
      %c0_58 = arith.constant 0 : index
      %c0_59 = arith.constant 0 : index
      %106 = vector.load %arg19[%c0_57, %105, %c0_58, %c0_59] : memref<1x7x4x4xf32, #tpu.memory_space<vmem>>, vector<1x1x4x4xf32>
      %107 = vector.shape_cast %106 : vector<1x1x4x4xf32> to vector<4x4xf32>
      %108 = vector.shape_cast %104 : vector<4x4xf32> to vector<1x1x4x4xf32>
      tpu.vector_store %arg19[%c0_57, %105, %c0_58, %c0_59], %108 {strides = array<i32>} : memref<1x7x4x4xf32, #tpu.memory_space<vmem>>, vector<1x1x4x4xf32>,
      scf.yield %90 : vector<4x32xf32>
    }
    %c7_i32_36 = arith.constant 7 : i32
    return
  }
  func.func @transform_0(%arg0: i32) -> (i32, i32, i32, i32) {
    %c0_i32 = arith.constant 0 : i32
    %c0_i32_0 = arith.constant 0 : i32
    %c0_i32_1 = arith.constant 0 : i32
    %c0_i32_2 = arith.constant 0 : i32
    return %arg0, %c0_i32, %c0_i32_0, %c0_i32_1 : i32, i32, i32, i32
  }
  func.func @transform_1(%arg0: i32) -> (i32, i32, i32) {
    %c0_i32 = arith.constant 0 : i32
    %c0_i32_0 = arith.constant 0 : i32
    %c0_i32_1 = arith.constant 0 : i32
    return %arg0, %c0_i32, %c0_i32_0 : i32, i32, i32
  }
  func.func @transform_2(%arg0: i32) -> (i32, i32) {
    %c0_i32 = arith.constant 0 : i32
    %c0_i32_0 = arith.constant 0 : i32
    %c0_i32_1 = arith.constant 0 : i32
    return %c0_i32, %c0_i32_0 : i32, i32
  }
  func.func @transform_3(%arg0: i32) -> (i32, i32) {
    %c0_i32 = arith.constant 0 : i32
    %c0_i32_0 = arith.constant 0 : i32
    %c0_i32_1 = arith.constant 0 : i32
    return %c0_i32, %c0_i32_0 : i32, i32
  }
  func.func @transform_4(%arg0: i32) -> (i32, i32) {
    %c0_i32 = arith.constant 0 : i32
    %c0_i32_0 = arith.constant 0 : i32
    %c0_i32_1 = arith.constant 0 : i32
    return %c0_i32, %c0_i32_0 : i32, i32
  }
  func.func @transform_5(%arg0: i32) -> (i32, i32) {
    %c0_i32 = arith.constant 0 : i32
    %c0_i32_0 = arith.constant 0 : i32
    %c0_i32_1 = arith.constant 0 : i32
    return %c0_i32, %c0_i32_0 : i32, i32
  }
  func.func @transform_6(%arg0: i32) -> (i32, i32) {
    %c0_i32 = arith.constant 0 : i32
    %c0_i32_0 = arith.constant 0 : i32
    %c0_i32_1 = arith.constant 0 : i32
    return %c0_i32, %c0_i32_0 : i32, i32
  }
  func.func @transform_7(%arg0: i32) -> (i32, i32, i32) {
    %c0_i32 = arith.constant 0 : i32
    %c0_i32_0 = arith.constant 0 : i32
    %c0_i32_1 = arith.constant 0 : i32
    %c0_i32_2 = arith.constant 0 : i32
    return %c0_i32, %c0_i32_0, %c0_i32_1 : i32, i32, i32
  }
  func.func @transform_8(%arg0: i32) -> (i32, i32, i32) {
    %c0_i32 = arith.constant 0 : i32
    %c0_i32_0 = arith.constant 0 : i32
    %c0_i32_1 = arith.constant 0 : i32
    %c0_i32_2 = arith.constant 0 : i32
    return %c0_i32, %c0_i32_0, %c0_i32_1 : i32, i32, i32
  }
  func.func @transform_9(%arg0: i32) -> (i32, i32) {
    %c0_i32 = arith.constant 0 : i32
    %c0_i32_0 = arith.constant 0 : i32
    %c0_i32_1 = arith.constant 0 : i32
    return %c0_i32, %c0_i32_0 : i32, i32
  }
  func.func @transform_10(%arg0: i32) -> (i32, i32) {
    %c0_i32 = arith.constant 0 : i32
    %c0_i32_0 = arith.constant 0 : i32
    %c0_i32_1 = arith.constant 0 : i32
    return %c0_i32, %c0_i32_0 : i32, i32
  }
  func.func @transform_11(%arg0: i32) -> (i32, i32) {
    %c0_i32 = arith.constant 0 : i32
    %c0_i32_0 = arith.constant 0 : i32
    %c0_i32_1 = arith.constant 0 : i32
    return %c0_i32, %c0_i32_0 : i32, i32
  }
  func.func @transform_12(%arg0: i32) -> (i32, i32) {
    %c0_i32 = arith.constant 0 : i32
    %c0_i32_0 = arith.constant 0 : i32
    %c0_i32_1 = arith.constant 0 : i32
    return %c0_i32, %c0_i32_0 : i32, i32
  }
  func.func @transform_13(%arg0: i32) -> (i32, i32) {
    %c0_i32 = arith.constant 0 : i32
    %c0_i32_0 = arith.constant 0 : i32
    %c0_i32_1 = arith.constant 0 : i32
    return %c0_i32, %c0_i32_0 : i32, i32
  }
  func.func @transform_14(%arg0: i32) -> (i32, i32) {
    %c0_i32 = arith.constant 0 : i32
    %c0_i32_0 = arith.constant 0 : i32
    %c0_i32_1 = arith.constant 0 : i32
    return %c0_i32, %c0_i32_0 : i32, i32
  }
  func.func @transform_15(%arg0: i32) -> (i32, i32) {
    %c0_i32 = arith.constant 0 : i32
    %c0_i32_0 = arith.constant 0 : i32
    %c0_i32_1 = arith.constant 0 : i32
    return %c0_i32, %c0_i32_0 : i32, i32
  }
  func.func @transform_16(%arg0: i32) -> (i32, i32) {
    %c0_i32 = arith.constant 0 : i32
    %c0_i32_0 = arith.constant 0 : i32
    %c0_i32_1 = arith.constant 0 : i32
    return %c0_i32, %c0_i32_0 : i32, i32
  }
  func.func @transform_17(%arg0: i32) -> (i32, i32) {
    %c0_i32 = arith.constant 0 : i32
    %c0_i32_0 = arith.constant 0 : i32
    %c0_i32_1 = arith.constant 0 : i32
    return %c0_i32, %c0_i32_0 : i32, i32
  }
  func.func @transform_18(%arg0: i32) -> (i32, i32, i32, i32) {
    %c0_i32 = arith.constant 0 : i32
    %c0_i32_0 = arith.constant 0 : i32
    %c0_i32_1 = arith.constant 0 : i32
    %c0_i32_2 = arith.constant 0 : i32
    return %arg0, %c0_i32, %c0_i32_0, %c0_i32_1 : i32, i32, i32, i32
  }
}

</mosaic_0001>

<bundles_post_ra>
// kernel: rnn_decoder_forward.1
= control target key start
LH: loop header
LB: loop body
LE: loop exit
PB: predicated region body
PF: predicated region fallthrough
CT: control target
= control target key end

     0   :  { %s2093_s27 = smov 0   ;;  %s2499_s0 = inlined_call_operand.vmem [shape: f32[2,7,4,4], index: 0, kind: input, shape index: {}]   ;;  %s2500_s1 = inlined_call_operand.vmem [shape: f32[2,12,2], index: 1, kind: input, shape index: {}]   ;;  %s2501_s2 = inlined_call_operand.vmem [shape: f32[24,4], index: 2, kind: input, shape index: {}]   ;;  %s2502_s3 = inlined_call_operand.vmem [shape: f32[4,12], index: 3, kind: input, shape index: {}]   ;;  %s2503_s4 = inlined_call_operand.vmem [shape: f32[32,64], index: 4, kind: input, shape index: {}]   ;;  %s2504_s5 = inlined_call_operand.vmem [shape: f32[32,64], index: 5, kind: input, shape index: {}]   ;;  %s2505_s6 = inlined_call_operand.vmem [shape: f32[1,64], index: 6, kind: input, shape index: {}]   ;;  %s2506_s7 = inlined_call_operand.vmem [shape: f32[2,32,32], index: 7, kind: input, shape index: {}]   ;;  %s2507_s8 = inlined_call_operand.vmem [shape: f32[2,1,32], index: 8, kind: input, shape index: {}]   ;;  %s2508_s9 = inlined_call_operand.vmem [shape: f32[4,96], index: 9, kind: input, shape index: {}]   ;;  %s2509_s10 = inlined_call_operand.vmem [shape: f32[1,96], index: 10, kind: input, shape index: {}]   ;;  %s2510_s11 = inlined_call_operand.vmem [shape: f32[32,96], index: 11, kind: input, shape index: {}]   ;;  %s2511_s12 = inlined_call_operand.vmem [shape: f32[32,32], index: 12, kind: input, shape index: {}]   ;;  %s2512_s13 = inlined_call_operand.vmem [shape: f32[1,32], index: 13, kind: input, shape index: {}]   ;;  %s2513_s14 = inlined_call_operand.vmem [shape: f32[32,32], index: 14, kind: input, shape index: {}]   ;;  %s2514_s15 = inlined_call_operand.vmem [shape: f32[1,32], index: 15, kind: input, shape index: {}]   ;;  %s2515_s16 = inlined_call_operand.vmem [shape: f32[32,4], index: 16, kind: input, shape index: {}]   ;;  %s2516_s17 = inlined_call_operand.vmem [shape: f32[1,4], index: 17, kind: input, shape index: {}]   ;;  %s2517_s18 = inlined_call_operand.vmem [shape: f32[2,7,4,4], index: 18, kind: output, shape index: {}]  }
   0x1   :  { %2520 = sst [smem:[#allocation2_spill]] %s2499_s0 }
   0x2   :  { %2521 = sst [smem:[#allocation3_spill]] %s2500_s1 }
   0x3   :  { %2522 = sst [smem:[#allocation4_spill]] %s2501_s2 }
   0x4   :  { %2523 = sst [smem:[#allocation5_spill]] %s2502_s3 }
   0x5 LB: > { %s1711_s28 = sadd.s32 4294967295, %s1982_s27   ;;  %p1715_p0 = scmp.ge.s32.totalorder %s1982_s27, 1  ;;  %s1982_s27 = sphi %s2093_s27, %s28_s27  }
   0x6   : > { %p522_p1 = scmp.lt.s32.totalorder %s1982_s27, 3 }
   0x8   : > { %p523_p2 = pnand %p1715_p0, %p522_p1 }
   0x9   : > { %p581_p3 = scmp.lt.s32.totalorder (!%p523_p2), %s1711_s28, 1  ;;  %s2524_s0 = sld [smem:[#allocation4_spill]] (!%p523_p2) }
   0xa   : > { %526 = sbr.rel (%p523_p2) target bundleno = 2361 (0x939), region = 92  ;;  %s2525_s3 = sld [smem:[#allocation5_spill]] (!%p523_p2) }
   0xb   : > { %s2526_s25 = sld [smem:[#allocation3_spill]] (!%p523_p2) }
   0xf   : > { %v2104_v0 = vld [vmem:[%s2524_s0] sm:$0xff]  ;;  %v2109_v1 = vld [vmem:[%s2524_s0 + $0x8] sm:$0xff]  ;;  %v2114_v2 = vld [vmem:[%s2524_s0 + $0x10] sm:$0xff]  ;;  %s2529_s28 = smov (!%p581_p3, %s1711_s28), 1  ;;  %v2338_v46 = vmov 0.0  }
  0x10   : > { %v2119_v3 = vld [vmem:[%s2525_s3] sm:$0xf]  ;;  %v2129_v5 = vld [vmem:[%s2503_s4 + $0x8] sm:$0xff]  ;;  %v2134_v6 = vld [vmem:[%s2503_s4 + $0x10] sm:$0xff]  ;;  %s1916_s29 = smul.u32 28, %s2529_s28  ;;  %s1751_s30 = sshll.u32 %s2529_s28, 4 }
  0x11   : > { %v2124_v4 = vld [vmem:[%s2503_s4] sm:$0xff]  ;;  %v2139_v7 = vld [vmem:[%s2503_s4 + $0x18] sm:$0xff]  ;;  %v2149_v9 = vld [vmem:[%s2504_s5 + $0x8] sm:$0xff]  ;;  %s590_s26 = scalar_lea.vmem %s2526_s25, %s1751_s30  ;;  %s2527_s3 = sld [smem:[#allocation2_spill]] }
  0x12   : > { %v2144_v8 = vld [vmem:[%s2504_s5] sm:$0xff]  ;;  %v2154_v10 = vld [vmem:[%s2504_s5 + $0x10] sm:$0xff]  ;;  %v2159_v11 = vld [vmem:[%s2504_s5 + $0x18] sm:$0xff]  ;;  %s2202_s0 = scalar_lea.vmem %s2517_s18, %s1916_s29  ;;  %s2340_s25 = smov 0  }
  0x13   : > { %v2164_v12 = vld [vmem:[%s2505_s6] ss:$0 sm:$0xff]  ;;  %v2174_v14 = vld [vmem:[%s2506_s7 + $0x8] sm:$0xff]  ;;  %v2182_v15 = vld [vmem:[%s2506_s7 + $0x10] sm:$0xff] }
  0x14   : > { %v2169_v13 = vld [vmem:[%s2506_s7] sm:$0xff]  ;;  %v2187_v16 = vld [vmem:[%s2506_s7 + $0x18] sm:$0xff]  ;;  %v2206_v19 = vld [vmem:[%s590_s26 + $0x8] sm:$0xf] }
  0x15   : > { %v2192_v17 = vld [vmem:[%s2506_s7 + $0x20] sm:$0xff]  ;;  %v2211_v20 = vld [vmem:[%s2506_s7 + $0x28] sm:$0xff]  ;;  %v2216_v21 = vld [vmem:[%s2506_s7 + $0x30] sm:$0xff] }
  0x16   : > { %v2204_v18 = vld [vmem:[%s590_s26] sm:$0xff]  ;;  %v2221_v22 = vld [vmem:[%s2506_s7 + $0x38] sm:$0xff]  ;;  %v2251_v28 = vld [vmem:[%s2510_s11 + $0x8] sm:$0xff] }
  0x17   : > { %s2197_s23 = scalar_lea.vmem %s2527_s3, %s1916_s29  ;;  %v2226_v23 = vld [vmem:[%s2507_s8] ss:$0 sm:$0xff]  ;;  %v2231_v24 = vld [vmem:[%s2507_s8 + $0x1] ss:$0 sm:$0xff]  ;;  %v2256_v29 = vld [vmem:[%s2510_s11 + $0x10] sm:$0xff] }
  0x18   : > { %v2236_v25 = vld [vmem:[%s2508_s9] sm:$0xf]  ;;  %v2261_v30 = vld [vmem:[%s2510_s11 + $0x18] sm:$0xff]  ;;  %v2271_v32 = vld [vmem:[%s2511_s12 + $0x8] sm:$0xff] }
  0x19   : > { %v2241_v26 = vld [vmem:[%s2509_s10] ss:$0 sm:$0xff]  ;;  %v2276_v33 = vld [vmem:[%s2511_s12 + $0x10] sm:$0xff]  ;;  %v2281_v34 = vld [vmem:[%s2511_s12 + $0x18] sm:$0xff] }
  0x1a   : > { %v2246_v27 = vld [vmem:[%s2510_s11] sm:$0xff]  ;;  %v2296_v37 = vld [vmem:[%s2513_s14 + $0x8] sm:$0xff]  ;;  %v2301_v38 = vld [vmem:[%s2513_s14 + $0x10] sm:$0xff] }
  0x1b   : > { %v2266_v31 = vld [vmem:[%s2511_s12] sm:$0xff]  ;;  %v2306_v39 = vld [vmem:[%s2513_s14 + $0x18] sm:$0xff]  ;;  %v2321_v42 = vld [vmem:[%s2515_s16 + $0x8] sm:$0xff] }
  0x1c   : > { %v2286_v35 = vld [vmem:[%s2512_s13] ss:$0 sm:$0xff]  ;;  %v2326_v43 = vld [vmem:[%s2515_s16 + $0x10] sm:$0xff]  ;;  %v2331_v44 = vld [vmem:[%s2515_s16 + $0x18] sm:$0xff] }
  0x1d   : > { %v2291_v36 = vld [vmem:[%s2513_s14] sm:$0xff] }
  0x1e   : > { %v2311_v40 = vld [vmem:[%s2514_s15] ss:$0 sm:$0xff] }
  0x1f   : > { %v2316_v41 = vld [vmem:[%s2515_s16] sm:$0xff] }
  0x20   : > { %v2336_v45 = vld [vmem:[%s2516_s17] ss:$0 sm:$0xff] }
  0x21 LB: >> { %1816 = vmatprep.subr.mxu1 %v2159_v11  ;;  %v1992_v47 = vmov 0.0   ;;  %vm1993_vm0 = vmmov 0   ;;  %s1994_s28 = smov 96   ;;  %vm665_vm1 = vcmask 1043456   ;;  %vm655_vm2 = vcmask 31744   ;;  %s1720_s19 = sshll.u32 %s1990_s25, 2  ;;  %s1990_s25 = sphi %s2340_s25, %s647_s25   ;;  %v1986_v46 = vphi %v2338_v46, %v1386_v46  }
  0x22   : >> { %1805 = vmatprep.subr.mxu0 %v1992_v47  ;;  %1807 = vmatprep.mubr.msk.f32.mxu0 %vm1993_vm0, %v1992_v47  ;;  %vm753_vm3 = vcmask 261120   ;;  %v1995_v58 = vmov 0   ;;  %vm1129_vm4 = vcmask 97280   ;;  %s650_s1 = scalar_lea.vmem %s2197_s23, %s1720_s19  ;;  %s1997_s3 = smov 64   ;;  %vm1630_vm5 = vcmask 27648  }
  0x23   : >> { %653 = vrot.lane.b32.xlu0 %v1986_v46, %s1994_s28  ;;  %1817 = vmatpush3.msra.mxu1 %v2159_v11  ;;  %s1629_s20 = scalar_lea.vmem %s2202_s0, %s1720_s19  ;;  %s647_s25 = sadd.s32 1, %s1990_s25  }
  0x24   : >> { %1818 = vmatprep.subr.mxu1 %v2154_v10  ;;  %1947 = vset.pattern.permute.xlu1 %v1995_v58  ;;  %p644_p4 = scmp.ge.s32.totalorder %s647_s25, 7  }
  0x25   : >> { %1819 = vmatpush3.msra.mxu1 %v2154_v10 }
  0x26   : >> { %1820 = vmatprep.subr.mxu1 %v2149_v9 }
  0x27   : >> { %1821 = vmatpush3.msra.mxu1 %v2149_v9 }
  0x28   : >> { %1822 = vmatprep.subr.mxu1 %v2144_v8 }
  0x29   : >> { %1823 = vmatpush3.msra.mxu1 %v2144_v8 }
  0x2a   : >> { %1838 = vmatprep.subr.mxu1 %v2187_v16 }
  0x95   : >> { %v654_v48 = vpop.permute.xlu0 %653 }
  0x96   : >> { %1806 = vmatpush3.msk.msra.mxu0 %vm665_vm1, %v654_v48 }
  0x97   : >> { %1808 = vmatmul.mubr.msk.f32.vlgmr.msra.gmra.mxu0 %vm655_vm2, %v2104_v0  ;;  %1827 = vmatprep.subr.mxu0 %v2139_v7 }
  0x98   : >> { %1810 = vmatprep.mubr.msk.f32.mxu0 %vm1993_vm0, %v1992_v47  ;;  %1828 = vmatpush3.msra.mxu0 %v2139_v7 }
  0x99   : >> { %1829 = vmatprep.subr.mxu0 %v2134_v6 }
  0x9a   : >> { %1830 = vmatpush3.msra.mxu0 %v2134_v6 }
  0x9b   : >> { %1811 = vmatmul.mubr.msk.f32.gmra.mxu0 %vm655_vm2, %v2109_v1  ;;  %1831 = vmatprep.subr.mxu0 %v2129_v5 }
  0x9c   : >> { %1813 = vmatprep.mubr.msk.f32.mxu0 %vm1993_vm0, %v1992_v47  ;;  %1832 = vmatpush3.msra.mxu0 %v2129_v5 }
  0x9d   : >> { %1833 = vmatprep.subr.mxu0 %v2124_v4 }
  0x9e   : >> { %1834 = vmatpush3.msra.mxu0 %v2124_v4 }
  0x9f   : >> { %1814 = vmatmul.mubr.msk.f32.gmra.mxu0 %vm655_vm2, %v2114_v2  ;;  %1849 = vmatprep.subr.mxu0 %v2221_v22 }
 0x157   : >> { %v734_v49 = vpop.f32.mrf.mxu0 }
 0x158   : >> { %1835 = vmatprep.mubr.msk.f32.mxu0 %vm753_vm3, %v734_v49 }
 0x159   : >> { %v1809_v50 = vpop.f32.mrf.mxu0 }
 0x15b   : >> { %v739_v51 = vpop.f32.mrf.mxu0 }
 0x15c   : >> { %1836 = vmatmul.mubr.msk.f32.vlgmr.msra.gmra.mxu0 %vm753_vm3, %v739_v51  ;;  %v750_v54 = vrot.slane %v739_v51, 4 }
 0x15d   : >> { %v1812_v52 = vpop.f32.mrf.mxu0  ;;  %1850 = vmatpush3.msra.mxu0 %v2221_v22 }
 0x15e   : >> { %1851 = vmatprep.subr.mxu0 %v2216_v21 }
 0x15f   : >> { %v744_v53 = vpop.f32.mrf.mxu0  ;;  %1852 = vmatpush3.msra.mxu0 %v2216_v21 }
 0x160   : >> { %v751_v55 = vrot.slane %v744_v53, 4  ;;  %1853 = vmatprep.subr.mxu0 %v2211_v20  ;;  %v1996_v53 = vmov 1  }
 0x161   : >> { %v1815_v56 = vpop.f32.mrf.mxu0  ;;  %1854 = vmatpush3.msra.mxu0 %v2211_v20  ;;  %1948 = vset.pattern.permute.xlu0 %v1996_v53 }
 0x162   : >> { %v752_v57 = vsel %vm665_vm1, %v750_v54, %v751_v55  ;;  %1855 = vmatprep.subr.mxu0 %v2192_v17 }
 0x163   : >> { %1824 = vmatprep.mubr.msk.f32.mxu1 %vm753_vm3, %v752_v57  ;;  %1856 = vmatpush3.msra.mxu0 %v2192_v17 }
 0x164   : >> { %1825 = vmatmul.mubr.msk.f32.vlgmr.msra.gmra.mxu1 %vm753_vm3, %v751_v55  ;;  %1872 = vmatprep.subr.mxu0 %v1992_v47 }
 0x165   : >> { %1839 = vmatpush3.msra.mxu1 %v2187_v16 }
 0x166   : >> { %1840 = vmatprep.subr.mxu1 %v2182_v15 }
 0x167   : >> { %1841 = vmatpush3.msra.mxu1 %v2182_v15 }
 0x168   : >> { %1842 = vmatprep.subr.mxu1 %v2174_v14 }
 0x169   : >> { %1843 = vmatpush3.msra.mxu1 %v2174_v14 }
 0x16a   : >> { %1844 = vmatprep.subr.mxu1 %v2169_v13 }
 0x16b   : >> { %1845 = vmatpush3.msra.mxu1 %v2169_v13 }
 0x16c   : >> { %1860 = vmatprep.subr.mxu1 %v1992_v47 }
 0x21c   : >> { %v1837_v59 = vpop.f32.mrf.mxu0 }
 0x21e   : >> { %v904_v62 = vpop.f32.mrf.mxu0 }
 0x224   : >> { %v1826_v60 = vpop.f32.mrf.mxu1 }
 0x225   : >> { %v910_v61 = vadd.f32 %v1837_v59, %v1826_v60 }
 0x226   : >> { %v824_v63 = vpop.f32.mrf.mxu1 }
 0x227   : >> { %v920_v48 = vadd.f32 %v2164_v12, %v910_v61  ;;  %v905_v49 = vadd.f32 %v904_v62, %v824_v63 }
 0x229   : >> { %1950 = vtanh.f32 %v920_v48  ;;  %v919_v50 = vadd.f32 %v2164_v12, %v905_v49 }
 0x22b   : >> { %1952 = vtanh.f32 %v919_v50 }
 0x236   : >> { %v1951_v51 = vpop.eup %1950 }
 0x237   : >> { %1034 = vrot.lane.b32.xlu1 %v1951_v51, %s1994_s28 }
 0x238   : >> { %v1953_v52 = vpop.eup %1952 }
 0x239   : >> { %1032 = vrot.lane.b32.xlu0 %v1953_v52, %s1994_s28  ;;  %1846 = vmatprep.mubr.msk.f32.mxu1 %vm753_vm3, %v1953_v52 }
 0x23a   : >> { %1847 = vmatmul.mubr.msk.f32.vlgmr.msra.gmra.mxu1 %vm753_vm3, %v1951_v51 }
 0x23b   : >> { %1019 = vperm.xlu1 %1947, %v2206_v19   ;;  %1864 = vmatprep.mubr.msk.f32.mxu1 %vm1993_vm0, %v1992_v47 }
 0x23d   : >> { %1122 = vperm.xlu0 %1948, %v2206_v19  }
 0x23f   : >> { %1014 = vperm.xlu1 %1947, %v2204_v18  }
 0x243   : >> { %1949 = vset.pattern.permute.xlu1 %v1996_v53 }
 0x244   : >> { %1118 = vperm.xlu1 %1949, %v2204_v18  }
 0x2a9   : >> { %v1035_v55 = vpop.permute.xlu1 %1034 }
 0x2ab   : >> { %v1033_v54 = vpop.permute.xlu0 %1032 }
 0x2ac   : >> { %1857 = vmatprep.mubr.msk.f32.mxu0 %vm753_vm3, %v1033_v54 }
 0x2ad   : >> { %1858 = vmatmul.mubr.msk.f32.vlgmr.msra.gmra.mxu0 %vm753_vm3, %v1035_v55 }
 0x2ae   : >> { %1873 = vmatpush3.msra.mxu0 %v2261_v30  ;;  %1880 = vmatprep.mubr.msk.f32.mxu0 %vm1993_vm0, %v1992_v47 }
 0x2af   : >> { %1874 = vmatprep.subr.mxu0 %v1992_v47 }
 0x2b0   : >> { %1875 = vmatpush3.msra.mxu0 %v2256_v29 }
 0x2b1   : >> { %1876 = vmatprep.subr.mxu0 %v1992_v47 }
 0x2b2   : >> { %1877 = vmatpush3.msra.mxu0 %v2251_v28 }
 0x2b3   : >> { %1878 = vmatprep.subr.mxu0 %v1992_v47 }
 0x2b4   : >> { %1879 = vmatpush3.msra.mxu0 %v2246_v27 }
 0x2b5   : >> { %1894 = vmatprep.subr.mxu0 %v1992_v47 }
 0x2b6   : >> { %v1020_v48 = vpop.permute.xlu1 %1019 }
 0x2b8   : >> { %v1123_v51 = vpop.permute.xlu0 %1122 }
 0x2ba   : >> { %v1015_v49 = vpop.permute.xlu1 %1014 }
 0x2bf   : >> { %v1119_v54 = vpop.permute.xlu1 %1118 }
 0x2fa   : >> { %v1848_v56 = vpop.f32.mrf.mxu1 }
 0x2fb   : >> { %v1007_v58 = vadd.f32 %v1848_v56, %v2226_v23 }
 0x2fc   : >> { %v1001_v57 = vpop.f32.mrf.mxu1 }
 0x2fd   : >> { %v1002_v59 = vadd.f32 %v2226_v23, %v1001_v57  ;;  %1954 = vtanh.f32 %v1007_v58 }
 0x2ff   : >> { %1956 = vtanh.f32 %v1002_v59 }
 0x30a   : >> { %v1955_v50 = vpop.eup %1954 }
 0x30b   : >> { %v1023_v55 = vmul.f32 %v1955_v50, %v1020_v48 }
 0x30c   : >> { %v1957_v52 = vpop.eup %1956 }
 0x30d   : >> { %v1022_v58 = vmul.f32 %v1957_v52, %v1015_v49 }
 0x36d   : >> { %v1859_v60 = vpop.f32.mrf.mxu0 }
 0x36e   : >> { %v1112_v61 = vadd.f32 %v1859_v60, %v2231_v24 }
 0x36f   : >> { %v1106_v62 = vpop.f32.mrf.mxu0 }
 0x370   : >> { %1958 = vtanh.f32 %v1112_v61  ;;  %v1107_v63 = vadd.f32 %v2231_v24, %v1106_v62  ;;  %v2444_v62 = vld [vmem:[%s650_s1] sm:$0xf] }
 0x372   : >> { %1960 = vtanh.f32 %v1107_v63 }
 0x37d   : >> { %v1959_v53 = vpop.eup %1958 }
 0x37e   : >> { %v1126_v56 = vmul.f32 %v1959_v53, %v1123_v51 }
 0x37f   : >> { %v1961_v57 = vpop.eup %1960 }
 0x380   : >> { %v1128_v59 = vadd.f32 %v1126_v56, %v1023_v55  ;;  %v1125_v60 = vmul.f32 %v1961_v57, %v1119_v54 }
 0x382   : >> { %v1127_v61 = vadd.f32 %v1125_v60, %v1022_v58  ;;  %1861 = vmatpush3.msk.msra.mxu1 %vm665_vm1, %v1128_v59 }
 0x383   : >> { %1862 = vmatprep.subr.mxu1 %v1992_v47 }
 0x384   : >> { %1863 = vmatpush3.msra.mxu1 %v1127_v61 }
 0x385   : >> { %1865 = vmatmul.mubr.msk.f32.vlgmr.msra.gmra.mxu1 %vm1129_vm4, %v2119_v3  ;;  %1867 = vmatprep.subr.mxu1 %v1992_v47 }
 0x386   : >> { %1868 = vmatpush3.msk.msra.mxu1 %vm665_vm1, %v2236_v25  ;;  %1869 = vmatprep.mubr.msk.f32.mxu1 %vm1993_vm0, %v1992_v47 }
 0x387   : >> { %1883 = vmatprep.subr.mxu1 %v1992_v47 }
 0x389   : >> { %1870 = vmatmul.mubr.msk.f32.vlgmr.msra.gmra.mxu1 %vm655_vm2, %v2444_v62 }
 0x38a   : >> { %1884 = vmatpush3.msra.mxu1 %v2281_v34  ;;  %1891 = vmatprep.mubr.msk.f32.mxu1 %vm1993_vm0, %v1992_v47 }
 0x38b   : >> { %1885 = vmatprep.subr.mxu1 %v1992_v47 }
 0x38c   : >> { %1886 = vmatpush3.msra.mxu1 %v2276_v33 }
 0x38d   : >> { %1887 = vmatprep.subr.mxu1 %v1992_v47 }
 0x38e   : >> { %1888 = vmatpush3.msra.mxu1 %v2271_v32 }
 0x38f   : >> { %1889 = vmatprep.subr.mxu1 %v1992_v47 }
 0x390   : >> { %1890 = vmatpush3.msra.mxu1 %v2266_v31 }
 0x391   : >> { %1905 = vmatprep.subr.mxu1 %v1992_v47 }
 0x445   : >> { %v1202_v63 = vpop.f32.mrf.mxu1 }
 0x446   : >> { %1881 = vmatmul.mubr.msk.f32.vlgmr.msra.gmra.mxu0 %vm753_vm3, %v1202_v63 }
 0x447   : >> { %v1866_v48 = vpop.f32.mrf.mxu1  ;;  %1895 = vmatpush3.msra.mxu0 %v2306_v39  ;;  %1902 = vmatprep.mubr.msk.f32.mxu0 %vm1993_vm0, %v1992_v47 }
 0x448   : >> { %1896 = vmatprep.subr.mxu0 %v1992_v47 }
 0x449   : >> { %1897 = vmatpush3.msra.mxu0 %v2301_v38  ;;  %v1284_v49 = vpop.f32.mrf.mxu1 }
 0x44a   : >> { %1898 = vmatprep.subr.mxu0 %v1992_v47  ;;  %v1285_v53 = vadd.f32 %v2241_v26, %v1284_v49 }
 0x44b   : >> { %1899 = vmatpush3.msra.mxu0 %v2296_v37  ;;  %v1871_v50 = vpop.f32.mrf.mxu1 }
 0x44c   : >> { %1900 = vmatprep.subr.mxu0 %v1992_v47 }
 0x44d   : >> { %1901 = vmatpush3.msra.mxu0 %v2291_v36 }
 0x506   : >> { %v1357_v51 = vpop.f32.mrf.mxu0 }
 0x507   : >> { %1369 = vrot.lane.b32.xlu0 %v1357_v51, %s1997_s3  ;;  %v1361_v54 = vadd.f32 %v1357_v51, %v1285_v53 }
 0x508   : >> { %v1882_v52 = vpop.f32.mrf.mxu0 }
 0x509   : >> { %v1742_v55 = vmul.f32 -1.442695, %v1361_v54 }
 0x50b   : >> { %1962 = vpow2.f32 %v1742_v55 }
 0x518   : >> { %v1963_v56 = vpop.eup %1962 }
 0x519   : >> { %v1365_v57 = vadd.f32 1.0, %v1963_v56 }
 0x51b   : >> { %1964 = vrcp.f32 %v1365_v57 }
 0x528   : >> { %v1965_v58 = vpop.eup %1964 }
 0x529   : >> { %v1379_v50 = vsub.f32 1.0, %v1965_v58  ;;  %v1385_v49 = vmul.f32 %v1986_v46, %v1965_v58 }
 0x579   : >> { %v1370_v59 = vpop.permute.xlu0 %1369 }
 0x57a   : >> { %v1372_v60 = vmul.f32 %v1965_v58, %v1370_v59 }
 0x57c   : >> { %1374 = vrot.lane.b32.xlu1 %v1372_v60, %s1997_s3 }
 0x5ee   : >> { %v1375_v61 = vpop.permute.xlu1 %1374 }
 0x5ef   : >> { %v1377_v63 = vadd.f32 %v1375_v61, %v1285_v53 }
 0x5f1   : >> { %1966 = vtanh.f32 %v1377_v63 }
 0x5fe   : >> { %v1967_v48 = vpop.eup %1966 }
 0x5ff   : >> { %1381 = vrot.lane.b32.xlu0 %v1967_v48, %s1994_s28 }
 0x671   : >> { %v1382_v52 = vpop.permute.xlu0 %1381 }
 0x672   : >> { %v1384_v51 = vmul.f32 %v1382_v52, %v1379_v50 }
 0x674   : >> { %v1386_v46 = vadd.f32 %v1385_v49, %v1384_v51  }
 0x676   : >> { %1394 = vrot.lane.b32.xlu1 %v1386_v46, %s1994_s28 }
 0x6e8   : >> { %v1395_v54 = vpop.permute.xlu1 %1394 }
 0x6e9   : >> { %1892 = vmatmul.mubr.msk.f32.vlgmr.msra.gmra.mxu1 %vm753_vm3, %v1395_v54 }
 0x6ea   : >> { %1906 = vmatpush3.msra.mxu1 %v2331_v44  ;;  %1913 = vmatprep.mubr.msk.f32.mxu1 %vm1993_vm0, %v1992_v47 }
 0x6eb   : >> { %1907 = vmatprep.subr.mxu1 %v1992_v47 }
 0x6ec   : >> { %1908 = vmatpush3.msra.mxu1 %v2326_v43 }
 0x6ed   : >> { %1909 = vmatprep.subr.mxu1 %v1992_v47 }
 0x6ee   : >> { %1910 = vmatpush3.msra.mxu1 %v2321_v42 }
 0x6ef   : >> { %1911 = vmatprep.subr.mxu1 %v1992_v47 }
 0x6f0   : >> { %1912 = vmatpush3.msra.mxu1 %v2316_v41 }
 0x7a9   : >> { %v1464_v53 = vpop.f32.mrf.mxu1 }
 0x7aa   : >> { %v1465_v55 = vadd.f32 %v2286_v35, %v1464_v53 }
 0x7ab   : >> { %v1893_v56 = vpop.f32.mrf.mxu1 }
 0x7ac   : >> { %v1468_v57 = vmax.f32 %v1465_v55, 0.0 }
 0x7ae   : >> { %1903 = vmatmul.mubr.msk.f32.vlgmr.msra.gmra.mxu0 %vm753_vm3, %v1468_v57 }
 0x86e   : >> { %v1544_v58 = vpop.f32.mrf.mxu0 }
 0x86f   : >> { %v1545_v59 = vadd.f32 %v2311_v40, %v1544_v58 }
 0x870   : >> { %v1904_v60 = vpop.f32.mrf.mxu0 }
 0x871   : >> { %v1548_v61 = vmax.f32 %v1545_v59, 0.0 }
 0x873   : >> { %1914 = vmatmul.mubr.msk.f32.vlgmr.msra.gmra.mxu1 %vm753_vm3, %v1548_v61 }
 0x933   : >> { %v1624_v63 = vpop.f32.mrf.mxu1 }
 0x934   : >> { %v1625_v48 = vadd.f32 %v2336_v45, %v1624_v63  ;;  %646 = sbr.rel (!%p644_p4) target bundleno = 33 (0x21), region = 134 }
 0x935   : >> { %v1915_v47 = vpop.f32.mrf.mxu1 }
 0x936   : >> { %v1628_v50 = vadd.f32 %v1625_v48, %v2444_v62 }
 0x938   : >> { %1631 = vst.msk [vmem:[%s1629_s20] sm:$0xf] %vm1630_vm5, %v1628_v50 }
 0x939 PF: > { %s28_s27 = sadd.s32 1, %s1982_s27  }
 0x93a   : > { %p25_p5 = scmp.ge.s32.totalorder %s28_s27, 4  }
 0x93c   :  { %27 = sbr.rel (!%p25_p5) target bundleno = 5 (0x5), region = 145 }

</bundles_post_ra>
